<compile_context>
chip_gen: v7x
topology: tpu7x:2x2x1
jax: 0.10.0
libtpu: 0.0.40
codegen_flags: <defaults>
</compile_context>

<pallas_src>
import jax
import jax.numpy as jnp
from jax.experimental import pallas as pl
from jax.experimental.pallas import tpu as pltpu


def _round_up(v, m):
    return ((v + m - 1) // m) * m


def _vmem_budget_bytes():
    """Per-core VMEM budget for pipeline buffers (~70% of physical capacity)."""
    cap = 128 * 1024 * 1024  # v5e / v6e physical VMEM
    try:
        cap = int(pltpu.get_tpu_info().vmem_capacity_bytes)  # 64 MiB on v7x
    except Exception:
        pass
    return int(cap * 0.7)


def query_mlp_kernel(x_ref, w_ref, o_ref):
    # K (contraction) is untiled: one full-K MXU pass per (i, j) grid step,
    # accumulated in f32 inside the dot and written straight to the output
    # tile. No accumulator scratch / pl.when init-finalize needed.
    o_ref[...] = jnp.dot(
        x_ref[...], w_ref[...], preferred_element_type=jnp.float32
    ).astype(o_ref.dtype)


def query_mlp_forward(x, w, heads, k_dim, *, compute_dtype=None):
    """QueryMLP forward.

    x: (..., input_dim); w: (input_dim, heads*k_dim) — transposed nn.Linear
    weight.  Returns (bs*heads, k_dim) where bs = prod of x's leading dims.
    compute_dtype: optionally cast x/w (e.g. jnp.bfloat16); accumulation stays
    f32.  Numerics change slightly when used.
    """
    input_dim = x.shape[-1]
    n_out = heads * k_dim
    assert w.shape == (input_dim, n_out)

    # glue: input.contiguous().view(-1, input_dim)
    x2 = x.reshape(-1, input_dim)
    bs = x2.shape[0]
    out_dtype = x2.dtype

    if compute_dtype is not None:
        x2 = x2.astype(compute_dtype)
        w = w.astype(compute_dtype)

    x_bpe = x2.dtype.itemsize
    w_bpe = w.dtype.itemsize
    o_bpe = jnp.dtype(out_dtype).itemsize

    # --- N padding: lane-dense output tiles (multiple of 128).  W is tiny, so
    # padding it (and slicing the padded output columns off) is cheap.  x is
    # never padded: K stays the full array dim, and ragged M is handled by
    # pl.cdiv grids with dropped out-of-bounds stores.
    n_pad = _round_up(n_out, 128)
    if n_pad != n_out:
        w = jnp.pad(w, ((0, 0), (0, n_pad - n_out)))

    # --- tile plan -----------------------------------------------------------
    budget = _vmem_budget_bytes()

    # N tile: hold W fully resident if it fits (then grid_n == 1 and both x and
    # W are DMA'd from HBM exactly once); otherwise the widest 128-multiple
    # strip that fits a chunk of the budget.
    if 2 * input_dim * n_pad * w_bpe <= budget // 2:
        tn = n_pad
    else:
        tn = 128
        for cand in (2048, 1024, 512, 256):
            if n_pad % cand == 0 and 2 * input_dim * cand * w_bpe <= int(budget * 0.4):
                tn = cand
                break

    # M tile: large row tiles amortize per-grid-step overhead on this
    # bandwidth-bound stream (512 f32 / 1024 bf16 rows), shrunk to fit VMEM.
    tm_max = 1024 if x_bpe <= 2 else 512
    tm = min(tm_max, _round_up(bs, 8))

    def vmem_est(tm_, tn_):
        # Double-buffered x / W / out blocks (constant-index blocks are fetched
        # once, but budget them conservatively).
        return (2 * tm_ * input_dim * x_bpe
                + 2 * input_dim * tn_ * w_bpe
                + 2 * tm_ * tn_ * o_bpe)

    while tm > 8 and vmem_est(tm, tn) > budget:
        tm = max(8, _round_up(tm // 2, 8))
    # TODO(synk): for extremely large input_dim even tm=8 may not fit VMEM; a
    # K-tiled accumulator path would be needed there (not a QueryMLP regime).

    grid_m = pl.cdiv(bs, tm)
    grid_n = n_pad // tn

    # Megacore (v7x has 2 TensorCores): make sure the parallel axes have >= 2
    # steps when the problem is big enough to split without dropping below 256
    # rows per tile.  No effect on v5e/v6e (1 TC) or on small problems.
    if grid_m == 1 and grid_n == 1 and tm >= 512:
        tm = _round_up(max(256, tm // 2), 8)
        grid_m = pl.cdiv(bs, tm)

    grid = (grid_m, grid_n)

    cost = pl.CostEstimate(
        flops=2 * bs * input_dim * n_pad,
        transcendentals=0,
        bytes_accessed=(bs * input_dim * x_bpe                         # x once
                        + (grid_m if grid_n > 1 else 1) * input_dim * n_pad * w_bpe
                        + bs * n_pad * o_bpe),
    )

    out_padded = pl.pallas_call(
        query_mlp_kernel,
        out_shape=jax.ShapeDtypeStruct((bs, n_pad), out_dtype),
        grid_spec=pltpu.PrefetchScalarGridSpec(
            num_scalar_prefetch=0,
            grid=grid,
            in_specs=[
                # x row tile: block index constant across j -> streamed once.
                pl.BlockSpec((tm, input_dim), lambda i, j: (i, 0)),
                # W tile: constant block index when grid_n == 1 -> VMEM-resident.
                pl.BlockSpec((input_dim, tn), lambda i, j: (0, j)),
            ],
            out_specs=pl.BlockSpec((tm, tn), lambda i, j: (i, j)),
        ),
        compiler_params=pltpu.CompilerParams(
            dimension_semantics=("parallel", "parallel"),
            vmem_limit_bytes=budget,
        ),
        cost_estimate=cost,
    )(x2, w)

    # glue: drop padded output columns, then query.view(bs * heads, k_dim)
    out = out_padded[:, :n_out] if n_pad != n_out else out_padded
    return out.reshape(bs * heads, k_dim)


if __name__ == "__main__":
    # Module hyper-parameters (small, consistent with the forward contract).
    input_dim = 32
    heads = 4
    k_dim = 16
    batch, seq = 2, 8                    # input (batch, seq, input_dim) -> bs = 16

    key = jax.random.PRNGKey(0)
    kx, kw, kx2 = jax.random.split(key, 3)

    # Deterministic parameter init mirroring nn.Linear's kaiming-uniform bound.
    bound = 1.0 / (input_dim ** 0.5)
    w_torch_layout = jax.random.uniform(
        kw, (heads * k_dim, input_dim), jnp.float32, -bound, bound
    )                                    # PyTorch layout: (out_features, in_features)
    w = w_torch_layout.T                 # kernel layout: (input_dim, heads*k_dim)

    x = jax.random.normal(kx, (batch, seq, input_dim), jnp.float32)

    out = query_mlp_forward(x, w, heads, k_dim)
    out = jax.block_until_ready(out)

    # Reference check (pure JAX) of the exact PyTorch semantics.
    ref = (x.reshape(-1, input_dim) @ w_torch_layout.T).reshape(
        batch * seq * heads, k_dim
    )
    assert out.shape == (batch * seq * heads, k_dim)
    assert jnp.allclose(out, ref, atol=1e-5, rtol=1e-5)

    # Second check: row count not a multiple of the M tile exercises the
    # ragged-M (partial last block, dropped OOB stores) path — no x padding.
    x_odd = jax.random.normal(kx2, (3, 5, input_dim), jnp.float32)   # bs = 15
    out_odd = jax.block_until_ready(query_mlp_forward(x_odd, w, heads, k_dim))
    ref_odd = (x_odd.reshape(-1, input_dim) @ w_torch_layout.T).reshape(
        15 * heads, k_dim
    )
    assert out_odd.shape == (15 * heads, k_dim)
    assert jnp.allclose(out_odd, ref_odd, atol=1e-5, rtol=1e-5)

    print("KERNEL_OK")
</pallas_src>

<mosaic_0001>
module attributes {stable_mosaic.version = 11 : i64} {
  func.func @query_mlp_kernel(%arg0: i32, %arg1: i32, %arg2: memref<16x32xf32, #tpu.memory_space<vmem>>, %arg3: memref<32x128xf32, #tpu.memory_space<vmem>>, %arg4: memref<16x128xf32, #tpu.memory_space<vmem>>) attributes {dimension_semantics = [#tpu.dimension_semantics<parallel>, #tpu.dimension_semantics<parallel>], iteration_bounds = array<i64: 1, 1>, scalar_prefetch = 0 : i64, scratch_operands = 0 : i64, tpu.core_type = #tpu.core_type<tc>, window_params = [{transform_indices = @transform_0, window_bounds = array<i64: 16, 32>}, {transform_indices = @transform_1, window_bounds = array<i64: 32, 128>}, {transform_indices = @transform_2, window_bounds = array<i64: 16, 128>}]} {
    %c0 = arith.constant 0 : index
    %c0_0 = arith.constant 0 : index
    %0 = vector.load %arg2[%c0, %c0_0] : memref<16x32xf32, #tpu.memory_space<vmem>>, vector<16x32xf32>
    %c0_1 = arith.constant 0 : index
    %c0_2 = arith.constant 0 : index
    %1 = vector.load %arg3[%c0_1, %c0_2] : memref<32x128xf32, #tpu.memory_space<vmem>>, vector<32x128xf32>
    %cst = arith.constant dense<0.000000e+00> : vector<16x128xf32>
    %2 = tpu.matmul %0, %1, %cst {dimension_numbers = #tpu.dot_dimension_numbers<[1], [0], [0], [1], [0, 0, 1, 1], [], []>} : vector<16x32xf32>, vector<32x128xf32>, vector<16x128xf32> -> vector<16x128xf32>
    %c0_3 = arith.constant 0 : index
    %c0_4 = arith.constant 0 : index
    %3 = vector.load %arg4[%c0_3, %c0_4] : memref<16x128xf32, #tpu.memory_space<vmem>>, vector<16x128xf32>
    tpu.vector_store %arg4[%c0_3, %c0_4], %2 {strides = array<i32>} : memref<16x128xf32, #tpu.memory_space<vmem>>, vector<16x128xf32>,
    return
  }
  func.func @transform_0(%arg0: i32, %arg1: i32) -> (i32, i32) {
    %c0_i32 = arith.constant 0 : i32
    %c0_i32_0 = arith.constant 0 : i32
    return %arg0, %c0_i32 : i32, i32
  }
  func.func @transform_1(%arg0: i32, %arg1: i32) -> (i32, i32) {
    %c0_i32 = arith.constant 0 : i32
    %c0_i32_0 = arith.constant 0 : i32
    return %c0_i32, %arg1 : i32, i32
  }
  func.func @transform_2(%arg0: i32, %arg1: i32) -> (i32, i32) {
    %c0_i32 = arith.constant 0 : i32
    return %arg0, %arg1 : i32, i32
  }
}

</mosaic_0001>

<bundles_post_ra>
// kernel: tpu_custom_call.1
= control target key start
LH: loop header
LB: loop body
LE: loop exit
PB: predicated region body
PF: predicated region fallthrough
CT: control target
= control target key end

     0   :  { %7 = vsyncpa [#allocation3], 0  ;;  %s317_s0 = inlined_call_operand.hbm [shape: f32[16,32], index: 0, kind: input, shape index: {}]   ;;  %s318_s1 = inlined_call_operand.hbm [shape: f32[32,128], index: 1, kind: input, shape index: {}]   ;;  %s319_s2 = inlined_call_operand.hbm [shape: f32[16,128], index: 2, kind: output, shape index: {}]  }
   0x1   :  { %8 = vsyncpa [#allocation6], 0 }
   0x2   :  { %9 = vsyncpa [#allocation4], 0  ;;  %s252_s9 = smov [#allocation2]   ;;  %s180_s13 = scalar_lea.hbm %s317_s0, 256 }
   0x3   :  { %s15_s10 = sshll.u32 %s252_s9, 4  ;;  %p181_p0 = scmp.ne.s32.totalorder %s317_s0, %s180_s13  ;;  %s16_s10 = int_to_ptr.vmem [resolvable:$true] %s15_s10 }
   0x4   :  { %p184_p1 = scmp.lt.u32.totalorder %s180_s13, %s317_s0 }
   0x6   :  { %p186_p2 = pnand %p184_p1, %p181_p0 }
   0x8   :  { %189 = shalt.err (!%p186_p2)
}
   0x9   :  { %s190_s18 = scalar_lea.vmem %s16_s10, 256  ;;  %p195_p4 = scmp.lt.s32.totalorder %s16_s10, %s16_s10 }
   0xa   :  { %p191_p3 = scmp.ne.s32.totalorder %s16_s10, %s190_s18  ;;  %p196_p5 = scmp.lt.s32.totalorder %s190_s18, %s190_s18 }
   0xc   :  { %p197_p6 = por %p196_p5, %p195_p4 }
   0xe   :  { %p198_p7 = pnand %p197_p6, %p191_p3 }
  0x10   :  { %201 = shalt.err (!%p198_p7)
}
  0x11   :  { %s253_s19 = smov 128   ;;  %s254_s20 = smov 8  }
  0x12   :  { %21 = dma.hbm_to_vmem [thread:$0]  %s317_s0, 256, %s16_s10, [#allocation3], %s253_s19, %s253_s19, %s254_s20  }
  0x13   :  { %s255_s23 = smov [#allocation5]   ;;  %s202_s27 = scalar_lea.hbm %s318_s1, 512 }
  0x14   :  { %s27_s24 = sshll.u32 %s255_s23, 4  ;;  %p203_p8 = scmp.ne.s32.totalorder %s318_s1, %s202_s27  ;;  %s28_s24 = int_to_ptr.vmem [resolvable:$true] %s27_s24 }
  0x15   :  { %p206_p9 = scmp.lt.u32.totalorder %s202_s27, %s318_s1 }
  0x17   :  { %p208_p10 = pnand %p206_p9, %p203_p8 }
  0x19   :  { %211 = shalt.err (!%p208_p10)
}
  0x1a   :  { %s212_s4 = scalar_lea.vmem %s28_s24, 512  ;;  %p217_p12 = scmp.lt.s32.totalorder %s28_s24, %s28_s24 }
  0x1b   :  { %p213_p11 = scmp.ne.s32.totalorder %s28_s24, %s212_s4  ;;  %p218_p13 = scmp.lt.s32.totalorder %s212_s4, %s212_s4 }
  0x1d   :  { %p219_p0 = por %p218_p13, %p217_p12 }
  0x1f   :  { %p220_p1 = pnand %p219_p0, %p213_p11 }
  0x21   :  { %223 = shalt.err (!%p220_p1)
}
  0x22   :  { %33 = dma.hbm_to_vmem [thread:$0]  %s318_s1, 512, %s28_s24, [#allocation6], %s253_s19, %s253_s19, %s254_s20  }
  0x23   :  { %246 = dma.done.wait [#allocation3], 256  }
  0x24   :  { %247 = vsyncadd [#allocation3], 4294967040 }
  0x25   :  { %248 = dma.done.wait [#allocation6], 512  }
  0x26   :  { %249 = vsyncadd [#allocation6], 4294966784  ;;  %vm46_vm0 = vcmask 261120   ;;  %v42_v0 = vld [vmem:[#allocation5] sm:$0xff]  ;;  %v43_v1 = vld [vmem:[#allocation5 + $0x8] sm:$0xff]  ;;  %s256_s1 = smov [#allocation7]  }
  0x27   :  { %v44_v2 = vld [vmem:[#allocation5 + $0x10] sm:$0xff]  ;;  %v167_v3 = vpack.c.bf16 %v43_v1, %v42_v0  ;;  %v45_v4 = vld [vmem:[#allocation5 + $0x18] sm:$0xff]  ;;  %s135_s6 = sshll.u32 %s256_s1, 4  ;;  %s136_s6 = int_to_ptr.vmem [resolvable:$true] %s135_s6 }
  0x28   :  { %v40_v5 = vld [vmem:[#allocation2] sm:$0xff]  ;;  %v171_v6 = vpack.c.bf16 %v45_v4, %v44_v2  ;;  %v41_v7 = vld [vmem:[#allocation2 + $0x8] sm:$0xff]  ;;  %s224_s7 = scalar_lea.vmem %s136_s6, 256  ;;  %p229_p3 = scmp.lt.s32.totalorder %s136_s6, %s136_s6 }
  0x29   :  { %164 = vmatprep.mubr.msk.f32.mxu0 %vm46_vm0, %v40_v5  ;;  %168 = vmatprep.subr.bf16.mxu0 %v167_v3  ;;  %p225_p2 = scmp.ne.s32.totalorder %s136_s6, %s224_s7  ;;  %p230_p4 = scmp.lt.s32.totalorder %s224_s7, %s224_s7 }
  0x2a   :  { %170 = vmatpush3.bf16.msra.mxu0 %v167_v3 }
  0x2b   :  { %172 = vmatprep.subr.bf16.mxu0 %v171_v6  ;;  %p231_p5 = por %p230_p4, %p229_p3 }
  0x2d   :  { %p232_p6 = pnand %p231_p5, %p225_p2 }
  0x2e   :  { %174 = vmatpush3.bf16.msra.mxu0 %v171_v6 }
  0x31   :  { %165 = vmatmul.mubr.msk.f32.vlgmr.msra.gmra.mrb[0].mxu0 %vm46_vm0, %v41_v7 }
 0x104   :  { %v166_v8 = vpop.f32.mrb[0].mxu0 }
 0x105   :  { %129 = vst [vmem:[#allocation7 + $0x8] sm:$0xff] %v166_v8  ;;  %v119_v9 = vpop.f32.mrb[1].mxu0 }
 0x106   :  { %128 = vst [vmem:[#allocation7] sm:$0xff] %v119_v9 }
 0x107   :  { %235 = shalt.err (!%p232_p6)
}
 0x108   :  { %s236_s10 = scalar_lea.hbm %s319_s2, 256 }
 0x109   :  { %p237_p7 = scmp.ne.s32.totalorder %s319_s2, %s236_s10  ;;  %p240_p8 = scmp.lt.u32.totalorder %s236_s10, %s319_s2 }
 0x10b   :  { %p242_p9 = pnand %p240_p8, %p237_p7 }
 0x10d   :  { %245 = shalt.err (!%p242_p9)
}
 0x10e   :  { %141 = dma.vmem_to_hbm [thread:$0]  %s136_s6, 256, %s319_s2, [#allocation4], %s253_s19, %s253_s19, %s254_s20  }
 0x10f   :  { %250 = dma.done.wait [#allocation4], 256  }
 0x110   :  { %251 = vsyncadd [#allocation4], 4294967040 }
 0x111   :  { %145 = vsyncpa [#allocation3], 1 }
 0x112   :  { %146 = vsyncpa [#allocation6], 1 }
 0x113   :  { %147 = vsyncpa [#allocation4], 1 }

</bundles_post_ra>
